<compile_context>
chip_gen: v7x
topology: tpu7x:2x2x1
jax: 0.10.0
libtpu: 0.0.40
codegen_flags: <defaults>
</compile_context>

<pallas_src>
import jax
import jax.numpy as jnp
from jax.experimental import pallas as pl
from jax.experimental.pallas import tpu as pltpu


# ----------------------------- hardware probes ------------------------------

def _device_kind():
    try:
        return jax.devices()[0].device_kind.lower()
    except Exception:
        return ""


def _num_tensorcores_per_chip():
    # v7x has 2 TensorCores per chip; v5e/v6e have 1.
    return 2 if "v7" in _device_kind() else 1


def _mxu_width():
    # <= v5 generations have 128x128 MXUs; v6e/v7x have 256x256.
    kind = _device_kind()
    return 128 if any(f"v{n}" in kind for n in (2, 3, 4, 5)) else 256


# ----------------------------- tiling selection ------------------------------

def _select_tiles(B, H, n_tc, max_tb=4096):
    """Pick (tb, chunk, grid_steps) for a (B, S) activation stream.

    chunk bounds the live (chunk, H) f32 hidden slab to <= ~16 vregs; tb is a
    multiple of chunk, as large as VMEM comfortably allows (per-buffer VMEM at
    tb=4096 is ~2 MiB, well under every generation's scoped limit).  On v7x we
    cap tb so the 1-D grid has >= 2 steps and both TensorCores get work; on
    single-TC chips (v5e/v6e) we keep the fewest, largest steps.
    """
    h_vregs_per_8rows = max(1, (H + 127) // 128)
    chunk = max(8, 8 * max(1, 16 // h_vregs_per_8rows))     # H<=128 -> 128 rows
    if B <= chunk:
        return B, B, 1
    tb = max(chunk, (min(max_tb, B) // chunk) * chunk)
    if n_tc > 1 and B >= n_tc * chunk:
        tb = min(tb, max(chunk, (B // (n_tc * chunk)) * chunk))
    grid_steps = -(-B // tb)
    return tb, chunk, grid_steps


# --------------------------------- kernel ------------------------------------

def _make_kernel(chunk, n_chunks, use_mxu):
    def kernel(x_ref, w1_ref, b1w2_ref, b2_ref, out_ref):
        # x_ref:    (tb, S) activation tile (batch on sublanes), f32 or bf16
        # w1_ref:   (S, H)  resident fc1 weight
        # b1w2_ref: (2, H)  resident fused constants: row 0 = b1, row 1 = w2
        # b2_ref:   (1, 1)  SMEM scalar fc2 bias
        # out_ref:  (tb, 1) value output
        w1 = w1_ref[...].astype(jnp.float32)         # hoisted, stays in vregs
        b1 = b1w2_ref[0:1, :].astype(jnp.float32)    # (1, H)
        w2 = b1w2_ref[1:2, :].astype(jnp.float32)    # (1, H)
        b2 = b2_ref[0, 0]
        S = w1.shape[0]

        def process(row0):
            x = x_ref[pl.ds(row0, chunk), :].astype(jnp.float32)   # (chunk, S)
            if use_mxu:
                h = jnp.dot(x, w1, preferred_element_type=jnp.float32)
            else:
                # Depth-S contraction as S unrolled VPU FMAs (outer product);
                # avoids a <13%-utilized MXU round trip for shallow/narrow fc1.
                h = x[:, 0:1] * w1[0:1, :]
                for s in range(1, S):
                    h = h + x[:, s:s + 1] * w1[s:s + 1, :]
            h = jnp.maximum(h + b1, 0.0)                            # ReLU
            # fc2 (H -> 1): VPU multiply + lane reduce on the XLU, no MXU.
            v = jnp.sum(h * w2, axis=1, keepdims=True) + b2         # (chunk, 1)
            out_ref[pl.ds(row0, chunk), :] = v.astype(out_ref.dtype)

        if n_chunks == 1:
            process(0)
        else:
            def body(i, carry):
                process(pl.multiple_of(i * chunk, chunk))
                return carry
            jax.lax.fori_loop(0, n_chunks, body, 0, unroll=True)

    return kernel


# --------------------------------- wrapper ------------------------------------

def baseline_network_forward(state, w1, b1, w2, b2):
    """state: (B, S); w1: (S, H); b1: (H,); w2: (H, 1); b2: (1,).

    Returns (B, 1) f32, matching PyTorch fc2(relu(fc1(state)))."""
    B, S = state.shape
    H = w1.shape[1]

    n_tc = _num_tensorcores_per_chip()
    tb, chunk, grid_steps = _select_tiles(B, H, n_tc)
    n_chunks = tb // chunk
    # MXU/VPU crossover keys on both S (contraction depth) and H (MXU rows),
    # with a generation-aware threshold (128-wide MXU on <=v5, 256 on v6e/v7x).
    use_mxu = (H >= 128) or (S > (16 if _mxu_width() == 128 else 32))

    # Tiny resident constants: fuse b1 and w2 into one (2, H) VMEM block.
    w1c = jnp.asarray(w1, jnp.float32)                                  # (S, H)
    b1w2 = jnp.stack([jnp.asarray(b1, jnp.float32).reshape(H),
                      jnp.asarray(w2, jnp.float32).reshape(H)], axis=0)  # (2, H)
    b2s = jnp.asarray(b2, jnp.float32).reshape(1, 1)

    x_spec = pl.BlockSpec((tb, S), lambda i: (i, 0))
    if grid_steps >= 3:
        # Deeper pipelining on the streamed activations (extra buffer costs
        # only ~tb*S*4 bytes); fall back silently if unsupported.
        try:
            x_spec = pl.BlockSpec((tb, S), lambda i: (i, 0),
                                  pipeline_mode=pl.Buffered(3))
        except Exception:
            pass

    out = pl.pallas_call(
        _make_kernel(chunk, n_chunks, use_mxu),
        out_shape=jax.ShapeDtypeStruct((B, 1), jnp.float32),
        grid=(grid_steps,),
        in_specs=[
            x_spec,                                              # streamed activations
            pl.BlockSpec((S, H), lambda i: (0, 0)),              # resident fc1 weight
            pl.BlockSpec((2, H), lambda i: (0, 0)),              # resident [b1; w2]
            pl.BlockSpec(memory_space=pltpu.MemorySpace.SMEM),   # b2 scalar
        ],
        out_specs=pl.BlockSpec((tb, 1), lambda i: (i, 0)),
        compiler_params=pltpu.CompilerParams(
            dimension_semantics=("parallel",),
        ),
    )(state, w1c, b1w2, b2s)

    return out


def init_params(key, state_size, hidden_size):
    """Deterministic init mimicking PyTorch nn.Linear default (uniform +-1/sqrt(fan_in))."""
    k1, k2, k3, k4 = jax.random.split(key, 4)
    bound1 = 1.0 / jnp.sqrt(state_size)
    bound2 = 1.0 / jnp.sqrt(hidden_size)
    w1 = jax.random.uniform(k1, (state_size, hidden_size), jnp.float32, -bound1, bound1)
    b1 = jax.random.uniform(k2, (hidden_size,), jnp.float32, -bound1, bound1)
    w2 = jax.random.uniform(k3, (hidden_size, 1), jnp.float32, -bound2, bound2)
    b2 = jax.random.uniform(k4, (1,), jnp.float32, -bound2, bound2)
    return w1, b1, w2, b2


if __name__ == "__main__":
    key = jax.random.PRNGKey(0)
    k_params, k_state = jax.random.split(key)

    batch, state_size, hidden_size = 8, 4, 32

    w1, b1, w2, b2 = init_params(k_params, state_size, hidden_size)
    state = jax.random.normal(k_state, (batch, state_size), jnp.float32)

    out = baseline_network_forward(state, w1, b1, w2, b2)
    out = jax.block_until_ready(out)

    # Pure-JAX reference check of the forward-pass semantics.
    ref = jnp.maximum(state @ w1 + b1, 0.0) @ w2 + b2
    assert out.shape == (batch, 1)
    assert jnp.allclose(out, ref, atol=1e-5, rtol=1e-5)

    print("KERNEL_OK")
</pallas_src>

<mosaic_0001>
module attributes {stable_mosaic.version = 11 : i64} {
  func.func @kernel(%arg0: i32, %arg1: memref<8x4xf32, #tpu.memory_space<vmem>>, %arg2: memref<4x32xf32, #tpu.memory_space<vmem>>, %arg3: memref<2x32xf32, #tpu.memory_space<vmem>>, %arg4: memref<1x1xf32, #tpu.memory_space<smem>>, %arg5: memref<8x1xf32, #tpu.memory_space<vmem>>) attributes {dimension_semantics = [#tpu.dimension_semantics<parallel>], iteration_bounds = array<i64: 1>, scalar_prefetch = 0 : i64, scratch_operands = 0 : i64, tpu.core_type = #tpu.core_type<tc>, window_params = [{transform_indices = @transform_0, window_bounds = array<i64: 8, 4>}, {pipeline_mode = #tpu.pipeline_mode<synchronous>, transform_indices = @transform_1, window_bounds = array<i64: 4, 32>}, {pipeline_mode = #tpu.pipeline_mode<synchronous>, transform_indices = @transform_2, window_bounds = array<i64: 2, 32>}, {transform_indices = @transform_3, window_bounds = array<i64: 1, 1>}, {transform_indices = @transform_4, window_bounds = array<i64: 8, 1>}]} {
    %c0 = arith.constant 0 : index
    %c0_0 = arith.constant 0 : index
    %0 = vector.load %arg2[%c0, %c0_0] : memref<4x32xf32, #tpu.memory_space<vmem>>, vector<4x32xf32>
    %c0_1 = arith.constant 0 : index
    %c0_2 = arith.constant 0 : index
    %1 = vector.load %arg3[%c0_1, %c0_2] : memref<2x32xf32, #tpu.memory_space<vmem>>, vector<1x32xf32>
    %c1 = arith.constant 1 : index
    %c0_3 = arith.constant 0 : index
    %2 = vector.load %arg3[%c1, %c0_3] : memref<2x32xf32, #tpu.memory_space<vmem>>, vector<1x32xf32>
    %c0_4 = arith.constant 0 : index
    %c0_5 = arith.constant 0 : index
    %3 = memref.load %arg4[%c0_4, %c0_5] : memref<1x1xf32, #tpu.memory_space<smem>>
    %c0_6 = arith.constant 0 : index
    %c0_7 = arith.constant 0 : index
    %4 = vector.load %arg1[%c0_6, %c0_7] : memref<8x4xf32, #tpu.memory_space<vmem>>, vector<8x4xf32>
    %5 = vector.extract_strided_slice %4 {offsets = [0, 0], sizes = [8, 1], strides = [1, 1]} : vector<8x4xf32> to vector<8x1xf32>
    %6 = vector.extract_strided_slice %0 {offsets = [0, 0], sizes = [1, 32], strides = [1, 1]} : vector<4x32xf32> to vector<1x32xf32>
    %7 = vector.broadcast %5 : vector<8x1xf32> to vector<8x32xf32>
    %8 = vector.broadcast %6 : vector<1x32xf32> to vector<8x32xf32>
    %9 = arith.mulf %7, %8 : vector<8x32xf32>
    %10 = vector.extract_strided_slice %4 {offsets = [0, 1], sizes = [8, 1], strides = [1, 1]} : vector<8x4xf32> to vector<8x1xf32>
    %11 = vector.extract_strided_slice %0 {offsets = [1, 0], sizes = [1, 32], strides = [1, 1]} : vector<4x32xf32> to vector<1x32xf32>
    %12 = vector.broadcast %10 : vector<8x1xf32> to vector<8x32xf32>
    %13 = vector.broadcast %11 : vector<1x32xf32> to vector<8x32xf32>
    %14 = arith.mulf %12, %13 : vector<8x32xf32>
    %15 = arith.addf %9, %14 : vector<8x32xf32>
    %16 = vector.extract_strided_slice %4 {offsets = [0, 2], sizes = [8, 1], strides = [1, 1]} : vector<8x4xf32> to vector<8x1xf32>
    %17 = vector.extract_strided_slice %0 {offsets = [2, 0], sizes = [1, 32], strides = [1, 1]} : vector<4x32xf32> to vector<1x32xf32>
    %18 = vector.broadcast %16 : vector<8x1xf32> to vector<8x32xf32>
    %19 = vector.broadcast %17 : vector<1x32xf32> to vector<8x32xf32>
    %20 = arith.mulf %18, %19 : vector<8x32xf32>
    %21 = arith.addf %15, %20 : vector<8x32xf32>
    %22 = vector.extract_strided_slice %4 {offsets = [0, 3], sizes = [8, 1], strides = [1, 1]} : vector<8x4xf32> to vector<8x1xf32>
    %23 = vector.extract_strided_slice %0 {offsets = [3, 0], sizes = [1, 32], strides = [1, 1]} : vector<4x32xf32> to vector<1x32xf32>
    %24 = vector.broadcast %22 : vector<8x1xf32> to vector<8x32xf32>
    %25 = vector.broadcast %23 : vector<1x32xf32> to vector<8x32xf32>
    %26 = arith.mulf %24, %25 : vector<8x32xf32>
    %27 = arith.addf %21, %26 : vector<8x32xf32>
    %28 = vector.broadcast %1 : vector<1x32xf32> to vector<8x32xf32>
    %29 = arith.addf %27, %28 : vector<8x32xf32>
    %cst = arith.constant 0.000000e+00 : f32
    %30 = vector.broadcast %cst : f32 to vector<8x32xf32>
    %31 = arith.maximumf %29, %30 : vector<8x32xf32>
    %32 = vector.broadcast %2 : vector<1x32xf32> to vector<8x32xf32>
    %33 = arith.mulf %31, %32 : vector<8x32xf32>
    %cst_8 = arith.constant dense<0.000000e+00> : vector<8xf32>
    %34 = vector.multi_reduction <add>, %33, %cst_8 [1] : vector<8x32xf32> to vector<8xf32>
    %35 = vector.shape_cast %34 : vector<8xf32> to vector<8x1xf32>
    %36 = vector.broadcast %3 : f32 to vector<8x1xf32>
    %37 = arith.addf %35, %36 : vector<8x1xf32>
    %c0_9 = arith.constant 0 : index
    %c0_10 = arith.constant 0 : index
    %38 = vector.load %arg5[%c0_9, %c0_10] : memref<8x1xf32, #tpu.memory_space<vmem>>, vector<8x1xf32>
    tpu.vector_store %arg5[%c0_9, %c0_10], %37 {strides = array<i32>} : memref<8x1xf32, #tpu.memory_space<vmem>>, vector<8x1xf32>,
    return
  }
  func.func @transform_0(%arg0: i32) -> (i32, i32) {
    %c0_i32 = arith.constant 0 : i32
    %c0_i32_0 = arith.constant 0 : i32
    return %arg0, %c0_i32 : i32, i32
  }
  func.func @transform_1(%arg0: i32) -> (i32, i32) {
    %c0_i32 = arith.constant 0 : i32
    %c0_i32_0 = arith.constant 0 : i32
    %c0_i32_1 = arith.constant 0 : i32
    return %c0_i32, %c0_i32_0 : i32, i32
  }
  func.func @transform_2(%arg0: i32) -> (i32, i32) {
    %c0_i32 = arith.constant 0 : i32
    %c0_i32_0 = arith.constant 0 : i32
    %c0_i32_1 = arith.constant 0 : i32
    return %c0_i32, %c0_i32_0 : i32, i32
  }
  func.func @transform_3(%arg0: i32) -> (i32, i32) {
    %c0_i32 = arith.constant 0 : i32
    %c0_i32_0 = arith.constant 0 : i32
    %c0_i32_1 = arith.constant 0 : i32
    return %c0_i32, %c0_i32_0 : i32, i32
  }
  func.func @transform_4(%arg0: i32) -> (i32, i32) {
    %c0_i32 = arith.constant 0 : i32
    %c0_i32_0 = arith.constant 0 : i32
    return %arg0, %c0_i32 : i32, i32
  }
}

</mosaic_0001>

<bundles_post_ra>
// kernel: tpu_custom_call.1
= control target key start
LH: loop header
LB: loop body
LE: loop exit
PB: predicated region body
PF: predicated region fallthrough
CT: control target
= control target key end

     0   :  { %v97_v0 = vmov 0   ;;  %v98_v2 = vmov 2   ;;  %v99_v3 = vmov 1   ;;  %v100_v4 = vmov 3   ;;  %s144_s0 = inlined_call_operand.vmem [shape: f32[8,4], index: 0, kind: input, shape index: {}]   ;;  %s145_s1 = inlined_call_operand.vmem [shape: f32[4,32], index: 1, kind: input, shape index: {}]   ;;  %s146_s2 = inlined_call_operand.vmem [shape: f32[2,32], index: 2, kind: input, shape index: {}]   ;;  %s147_s3 = inlined_call_operand.<no memory space> [shape: f32[1,1], index: 3, kind: input, shape index: {}]   ;;  %s148_s4 = inlined_call_operand.vmem [shape: f32[8,1], index: 4, kind: output, shape index: {}]  }
   0x1   :  { %92 = vset.pattern.permute.xlu0 %v97_v0  ;;  %v22_v1 = vld [vmem:[%s144_s0] sm:$0xff]  ;;  %94 = vset.pattern.permute.xlu1 %v98_v2  ;;  %v28_v5 = vlaneseq  ;;  %vm74_vm0 = vcmask 261120   ;;  %v78_v33 = vstv %s147_s3  ;;  %vm80_vm1 = vcmask 7168  }
   0x2   :  { %25 = vperm.xlu0 %92, %v22_v1   ;;  %44 = vperm.xlu1 %94, %v22_v1   ;;  %v18_v9 = vld [vmem:[%s145_s1] sm:$0xf] }
   0x3   :  { %v29_v6 = vshrl.u32 %v28_v5, 7  ;;  %v86_v26 = vld [vmem:[%s146_s2] ss:$0 sm:$0xff]  ;;  %v87_v29 = vld [vmem:[%s146_s2 + $0x1] ss:$0 sm:$0xff] }
   0x5   :  { %v30_v7 = vsub.s32 0, %v29_v6  ;;  %v39_v8 = vsub.s32 1, %v29_v6  ;;  %v49_v11 = vsub.s32 2, %v29_v6  ;;  %v59_v13 = vsub.s32 3, %v29_v6 }
   0x6   :  { %93 = vset.pattern.permute.xlu0 %v99_v3  ;;  %95 = vset.pattern.permute.xlu1 %v100_v4 }
   0x7   :  { %34 = vperm.xlu0 %93, %v22_v1   ;;  %54 = vperm.xlu1 %95, %v22_v1   ;;  %v31_v14 = vrot.slane %v18_v9, %v30_v7  ;;  %v40_v15 = vrot.slane %v18_v9, %v39_v8  ;;  %v50_v16 = vrot.slane %v18_v9, %v49_v11 }
   0x8   :  { %v60_v17 = vrot.slane %v18_v9, %v59_v13 }
   0xb   :  { %96 = vset.pattern.permute.xlu0 %v100_v4 }
  0x81   :  { %v26_v10 = vpop.permute.xlu0 %25  ;;  %v45_v12 = vpop.permute.xlu1 %44 }
  0x82   :  { %v32_v20 = vmul.f32 %v31_v14, %v26_v10  ;;  %v51_v22 = vmul.f32 %v50_v16, %v45_v12 }
  0x86   :  { %v35_v18 = vpop.permute.xlu0 %34  ;;  %v55_v19 = vpop.permute.xlu1 %54 }
  0x87   :  { %v41_v21 = vmul.f32 %v40_v15, %v35_v18  ;;  %v61_v24 = vmul.f32 %v60_v17, %v55_v19 }
  0x89   :  { %v42_v23 = vadd.f32 %v41_v21, %v32_v20 }
  0x8b   :  { %v52_v25 = vadd.f32 %v51_v22, %v42_v23 }
  0x8d   :  { %v62_v27 = vadd.f32 %v61_v24, %v52_v25 }
  0x8f   :  { %v67_v28 = vadd.f32 %v86_v26, %v62_v27 }
  0x91   :  { %v68_v30 = vmax.f32 %v67_v28, 0.0 }
  0x93   :  { %v73_v31 = vmul.f32 %v87_v29, %v68_v30 }
  0x95   :  { %v75_v32 = vsel %vm74_vm0, %v73_v31, 0.0 }
  0x96   :  { %76 = vadd.xlane.f32.xlu1 %v75_v32 }
 0x123   :  { %v77_v34 = vpop.xlane.xlu1 %76 }
 0x124   :  { %v79_v35 = vadd.f32 %v78_v33, %v77_v34 }
 0x126   :  { %81 = vst.msk [vmem:[%s148_s4] sm:$0xff] %vm80_vm1, %v79_v35 }

</bundles_post_ra>
